<compile_context>
chip_gen: v7x
topology: tpu7x:2x2x1
jax: 0.10.0
libtpu: 0.0.40
codegen_flags: <defaults>
</compile_context>

<pallas_src>
import functools

import jax
import jax.numpy as jnp
from jax.experimental import pallas as pl
from jax.experimental.pallas import tpu as pltpu


def _round_up(a, b):
    return (a + b - 1) // b * b


def _make_subpixel_kernel(img_w, tm, tmh):
    """Conv3x3(valid) + bias + PReLU over a block of `tm` linear output pixels."""

    def kernel(x_ref, w_ref, b_ref, alpha_ref, o_ref):
        # x_ref:     (1, Lpad, Cin)  bf16 VMEM -- whole zero-padded image,
        #                                         resident across the j axis
        # w_ref:     (9, Cin, Cout)  bf16 VMEM -- tap-major conv weights
        # b_ref:     (1, Cout)       f32  VMEM
        # alpha_ref: (1,)            f32  SMEM -- PReLU shared slope
        # o_ref:     (1, tm, Cout)   bf16 VMEM
        j = pl.program_id(1)
        cout = o_ref.shape[-1]
        p0 = pl.multiple_of(j * tm, 8)
        # One aligned load of the pixel slab covering all 9 taps of this block.
        slab = x_ref[0, pl.ds(p0, tmh), :]                  # (tmh, Cin) bf16
        acc = jnp.zeros((tm, cout), jnp.float32)
        for t in range(9):
            kh, kw = divmod(t, 3)
            off = kh * img_w + kw                           # static tap offset
            tap = slab[off:off + tm, :]                     # (tm, Cin) bf16
            acc = acc + jnp.dot(tap, w_ref[t],
                                preferred_element_type=jnp.float32)
        acc = acc + b_ref[...]                              # bias (f32)
        alpha = alpha_ref[0]
        o_ref[0] = jnp.where(acc >= 0.0, acc, alpha * acc).astype(o_ref.dtype)

    return kernel


def sub_pixel_forward(x_nchw, w_oihw, bias, alpha, upscale_factor, *,
                      target_block_pixels=1024):
    """Equivalent of Sub_Pixel.forward. Returns NCHW f32 output."""
    r = upscale_factor
    N, C, H, W = x_nchw.shape
    Cout, Cin, KH, KW = w_oihw.shape
    assert Cin == C and KH == 3 and KW == 3 and Cout == C * r * r
    assert H >= 3 and W >= 3
    Ho, Wo = H - 2, W - 2                       # valid conv (padding=0)

    # --- single pre-pass: NCHW f32 -> flat pixel-major bf16 (N, H*W, Cin) ---
    x_flat = jnp.transpose(x_nchw, (0, 2, 3, 1)).reshape(N, H * W, C)
    x_flat = x_flat.astype(jnp.bfloat16)

    # Tap-major weights (kh, kw) x (Cin, Cout), matching the kernel loop order.
    w9 = jnp.transpose(w_oihw, (2, 3, 1, 0)).reshape(9, Cin, Cout)
    w9 = w9.astype(jnp.bfloat16)
    b_row = bias.reshape(1, Cout).astype(jnp.float32)
    alpha1 = jnp.asarray(alpha, jnp.float32).reshape(1)

    # --- pixel tiling: W columns computed per output row, last 2 discarded --
    P = Ho * W                                   # extended output pixels/image
    tm = min(_round_up(P, 8), _round_up(target_block_pixels, 8))
    # v7x: ensure >= 2 grid steps so both TensorCores get work.
    if N * pl.cdiv(P, tm) < 2 and P >= 16:
        tm = _round_up(pl.cdiv(P, 2), 8)
    gp = pl.cdiv(P, tm)
    tmh = tm + _round_up(2 * W + 2, 8)           # slab length incl. tap halo
    l_pad = (gp - 1) * tm + tmh                  # always >= H*W + 2
    x_flat = jnp.pad(x_flat, ((0, 0), (0, l_pad - H * W), (0, 0)))

    # --- VMEM budget from the real tile footprint, per-generation cap -------
    lane_in = _round_up(Cin, 128)
    lane_out = _round_up(Cout, 128)
    est = (2 * l_pad * lane_in * 2               # resident image (2 buffers)
           + 2 * tm * lane_out * 2               # output tiles (2 buffers)
           + tm * lane_out * 4                   # f32 accumulator spill
           + 10 * tmh * lane_in * 2              # slab + tap slices
           + (2 << 20))
    try:
        phys_vmem = int(getattr(pltpu.get_tpu_info(), "vmem_capacity_bytes",
                                64 * 1024 * 1024))
    except Exception:
        phys_vmem = 64 * 1024 * 1024
    cap = max(16 * 1024 * 1024, min(phys_vmem // 2, 64 * 1024 * 1024))
    vmem_limit = int(min(max(est, 4 * 1024 * 1024), cap))

    cost = pl.CostEstimate(
        flops=int(2 * N * gp * tm * 9 * Cin * Cout),
        transcendentals=0,
        bytes_accessed=int(N * l_pad * Cin * 2 + 9 * Cin * Cout * 2
                           + Cout * 4 + N * gp * tm * Cout * 2))

    kernel = _make_subpixel_kernel(W, tm, tmh)

    o_ext = pl.pallas_call(
        kernel,
        out_shape=jax.ShapeDtypeStruct((N, gp * tm, Cout), jnp.bfloat16),
        grid_spec=pltpu.PrefetchScalarGridSpec(
            num_scalar_prefetch=0,
            grid=(N, gp),
            in_specs=[
                pl.BlockSpec((1, l_pad, Cin), lambda n, j: (n, 0, 0)),   # image
                pl.BlockSpec((9, Cin, Cout), lambda n, j: (0, 0, 0)),    # weights
                pl.BlockSpec((1, Cout), lambda n, j: (0, 0)),            # bias
                pl.BlockSpec((1,), lambda n, j: (0,),
                             memory_space=pltpu.MemorySpace.SMEM),       # alpha
            ],
            out_specs=pl.BlockSpec((1, tm, Cout), lambda n, j: (n, j, 0)),
        ),
        compiler_params=pltpu.CompilerParams(
            dimension_semantics=("parallel", "parallel"),
            vmem_limit_bytes=vmem_limit),
        cost_estimate=cost,
    )(x_flat, w9, b_row, alpha1)

    # --- PixelShuffle(r): drop the 2 wrapped columns, one XLA transpose -----
    y = o_ext[:, :Ho * W, :].reshape(N, Ho, W, C, r, r)[:, :, :Wo]
    y = jnp.transpose(y, (0, 3, 1, 4, 2, 5))     # (N, C, Ho, r, Wo, r)
    return y.reshape(N, C, Ho * r, Wo * r).astype(jnp.float32)


def _reference_forward(x_nchw, w_oihw, bias, alpha, r):
    """Pure-JAX f32 reference matching the PyTorch module."""
    y = jax.lax.conv_general_dilated(
        x_nchw, w_oihw, window_strides=(1, 1), padding="VALID",
        dimension_numbers=("NCHW", "OIHW", "NCHW"))
    y = y + bias.reshape(1, -1, 1, 1)
    N, C4, Ho, Wo = y.shape
    C = C4 // (r * r)
    y = y.reshape(N, C, r, r, Ho, Wo)
    y = jnp.transpose(y, (0, 1, 4, 2, 5, 3)).reshape(N, C, Ho * r, Wo * r)
    return jnp.where(y >= 0.0, y, alpha * y)


if __name__ == "__main__":
    # Small shapes consistent with the module: N=2, channels=4, 16x16, r=2.
    N, C, H, W = 2, 4, 16, 16
    r = 2
    Cout = C * r * r

    key = jax.random.PRNGKey(0)
    kx, kw, kb = jax.random.split(key, 3)
    x = jax.random.normal(kx, (N, C, H, W), dtype=jnp.float32)
    # Deterministic synthetic "trained" parameters.
    w = jax.random.normal(kw, (Cout, C, 3, 3), dtype=jnp.float32) * 0.1
    b = jax.random.normal(kb, (Cout,), dtype=jnp.float32) * 0.1
    alpha = jnp.float32(0.25)   # nn.PReLU() default single-parameter slope

    fwd = jax.jit(functools.partial(sub_pixel_forward, upscale_factor=r))
    out = jax.block_until_ready(fwd(x, w, b, alpha))

    ref = _reference_forward(x, w, b, alpha, r)
    assert out.shape == (N, C, (H - 2) * r, (W - 2) * r)
    # bf16 inputs/weights/stores with f32 accumulation -> loosened tolerance.
    assert jnp.allclose(out, ref, atol=2e-2, rtol=2e-2), "mismatch vs reference"

    print("KERNEL_OK")
</pallas_src>

<mosaic_0001>
module attributes {stable_mosaic.version = 11 : i64} {
  func.func @kernel(%arg0: i32, %arg1: i32, %arg2: memref<1x264x4xbf16, #tpu.memory_space<vmem>>, %arg3: memref<9x4x16xbf16, #tpu.memory_space<vmem>>, %arg4: memref<1x16xf32, #tpu.memory_space<vmem>>, %arg5: memref<1xf32, #tpu.memory_space<smem>>, %arg6: memref<1x224x16xbf16, #tpu.memory_space<vmem>>) attributes {dimension_semantics = [#tpu.dimension_semantics<parallel>, #tpu.dimension_semantics<parallel>], iteration_bounds = array<i64: 2, 1>, scalar_prefetch = 0 : i64, scratch_operands = 0 : i64, tpu.core_type = #tpu.core_type<tc>, window_params = [{transform_indices = @transform_0, window_bounds = array<i64: 1, 264, 4>}, {pipeline_mode = #tpu.pipeline_mode<synchronous>, transform_indices = @transform_1, window_bounds = array<i64: 9, 4, 16>}, {pipeline_mode = #tpu.pipeline_mode<synchronous>, transform_indices = @transform_2, window_bounds = array<i64: 1, 16>}, {transform_indices = @transform_3, window_bounds = array<i64: 1>}, {transform_indices = @transform_4, window_bounds = array<i64: 1, 224, 16>}]} {
    %c224_i32 = arith.constant 224 : i32
    %0 = arith.muli %arg1, %c224_i32 : i32
    %1 = tpu.assume_multiple %0, 8 : i32
    %c0 = arith.constant 0 : index
    %2 = arith.index_cast %1 : i32 to index
    %c0_0 = arith.constant 0 : index
    %3 = vector.load %arg2[%c0, %2, %c0_0] : memref<1x264x4xbf16, #tpu.memory_space<vmem>>, vector<1x264x4xbf16>
    %4 = vector.shape_cast %3 : vector<1x264x4xbf16> to vector<264x4xbf16>
    %cst = arith.constant 0.000000e+00 : f32
    %5 = vector.broadcast %cst : f32 to vector<224x16xf32>
    %6 = vector.extract_strided_slice %4 {offsets = [0, 0], sizes = [224, 4], strides = [1, 1]} : vector<264x4xbf16> to vector<224x4xbf16>
    %c0_1 = arith.constant 0 : index
    %c0_2 = arith.constant 0 : index
    %c0_3 = arith.constant 0 : index
    %7 = vector.load %arg3[%c0_1, %c0_2, %c0_3] : memref<9x4x16xbf16, #tpu.memory_space<vmem>>, vector<1x4x16xbf16>
    %8 = vector.shape_cast %7 : vector<1x4x16xbf16> to vector<4x16xbf16>
    %cst_4 = arith.constant dense<0.000000e+00> : vector<224x16xf32>
    %9 = tpu.matmul %6, %8, %cst_4 {dimension_numbers = #tpu.dot_dimension_numbers<[1], [0], [0], [1], [0, 0, 1, 1], [], []>} : vector<224x4xbf16>, vector<4x16xbf16>, vector<224x16xf32> -> vector<224x16xf32>
    %10 = arith.addf %5, %9 : vector<224x16xf32>
    %11 = vector.extract_strided_slice %4 {offsets = [1, 0], sizes = [224, 4], strides = [1, 1]} : vector<264x4xbf16> to vector<224x4xbf16>
    %c1 = arith.constant 1 : index
    %c0_5 = arith.constant 0 : index
    %c0_6 = arith.constant 0 : index
    %12 = vector.load %arg3[%c1, %c0_5, %c0_6] : memref<9x4x16xbf16, #tpu.memory_space<vmem>>, vector<1x4x16xbf16>
    %13 = vector.shape_cast %12 : vector<1x4x16xbf16> to vector<4x16xbf16>
    %cst_7 = arith.constant dense<0.000000e+00> : vector<224x16xf32>
    %14 = tpu.matmul %11, %13, %cst_7 {dimension_numbers = #tpu.dot_dimension_numbers<[1], [0], [0], [1], [0, 0, 1, 1], [], []>} : vector<224x4xbf16>, vector<4x16xbf16>, vector<224x16xf32> -> vector<224x16xf32>
    %15 = arith.addf %10, %14 : vector<224x16xf32>
    %16 = vector.extract_strided_slice %4 {offsets = [2, 0], sizes = [224, 4], strides = [1, 1]} : vector<264x4xbf16> to vector<224x4xbf16>
    %c2 = arith.constant 2 : index
    %c0_8 = arith.constant 0 : index
    %c0_9 = arith.constant 0 : index
    %17 = vector.load %arg3[%c2, %c0_8, %c0_9] : memref<9x4x16xbf16, #tpu.memory_space<vmem>>, vector<1x4x16xbf16>
    %18 = vector.shape_cast %17 : vector<1x4x16xbf16> to vector<4x16xbf16>
    %cst_10 = arith.constant dense<0.000000e+00> : vector<224x16xf32>
    %19 = tpu.matmul %16, %18, %cst_10 {dimension_numbers = #tpu.dot_dimension_numbers<[1], [0], [0], [1], [0, 0, 1, 1], [], []>} : vector<224x4xbf16>, vector<4x16xbf16>, vector<224x16xf32> -> vector<224x16xf32>
    %20 = arith.addf %15, %19 : vector<224x16xf32>
    %21 = vector.extract_strided_slice %4 {offsets = [16, 0], sizes = [224, 4], strides = [1, 1]} : vector<264x4xbf16> to vector<224x4xbf16>
    %c3 = arith.constant 3 : index
    %c0_11 = arith.constant 0 : index
    %c0_12 = arith.constant 0 : index
    %22 = vector.load %arg3[%c3, %c0_11, %c0_12] : memref<9x4x16xbf16, #tpu.memory_space<vmem>>, vector<1x4x16xbf16>
    %23 = vector.shape_cast %22 : vector<1x4x16xbf16> to vector<4x16xbf16>
    %cst_13 = arith.constant dense<0.000000e+00> : vector<224x16xf32>
    %24 = tpu.matmul %21, %23, %cst_13 {dimension_numbers = #tpu.dot_dimension_numbers<[1], [0], [0], [1], [0, 0, 1, 1], [], []>} : vector<224x4xbf16>, vector<4x16xbf16>, vector<224x16xf32> -> vector<224x16xf32>
    %25 = arith.addf %20, %24 : vector<224x16xf32>
    %26 = vector.extract_strided_slice %4 {offsets = [17, 0], sizes = [224, 4], strides = [1, 1]} : vector<264x4xbf16> to vector<224x4xbf16>
    %c4 = arith.constant 4 : index
    %c0_14 = arith.constant 0 : index
    %c0_15 = arith.constant 0 : index
    %27 = vector.load %arg3[%c4, %c0_14, %c0_15] : memref<9x4x16xbf16, #tpu.memory_space<vmem>>, vector<1x4x16xbf16>
    %28 = vector.shape_cast %27 : vector<1x4x16xbf16> to vector<4x16xbf16>
    %cst_16 = arith.constant dense<0.000000e+00> : vector<224x16xf32>
    %29 = tpu.matmul %26, %28, %cst_16 {dimension_numbers = #tpu.dot_dimension_numbers<[1], [0], [0], [1], [0, 0, 1, 1], [], []>} : vector<224x4xbf16>, vector<4x16xbf16>, vector<224x16xf32> -> vector<224x16xf32>
    %30 = arith.addf %25, %29 : vector<224x16xf32>
    %31 = vector.extract_strided_slice %4 {offsets = [18, 0], sizes = [224, 4], strides = [1, 1]} : vector<264x4xbf16> to vector<224x4xbf16>
    %c5 = arith.constant 5 : index
    %c0_17 = arith.constant 0 : index
    %c0_18 = arith.constant 0 : index
    %32 = vector.load %arg3[%c5, %c0_17, %c0_18] : memref<9x4x16xbf16, #tpu.memory_space<vmem>>, vector<1x4x16xbf16>
    %33 = vector.shape_cast %32 : vector<1x4x16xbf16> to vector<4x16xbf16>
    %cst_19 = arith.constant dense<0.000000e+00> : vector<224x16xf32>
    %34 = tpu.matmul %31, %33, %cst_19 {dimension_numbers = #tpu.dot_dimension_numbers<[1], [0], [0], [1], [0, 0, 1, 1], [], []>} : vector<224x4xbf16>, vector<4x16xbf16>, vector<224x16xf32> -> vector<224x16xf32>
    %35 = arith.addf %30, %34 : vector<224x16xf32>
    %36 = vector.extract_strided_slice %4 {offsets = [32, 0], sizes = [224, 4], strides = [1, 1]} : vector<264x4xbf16> to vector<224x4xbf16>
    %c6 = arith.constant 6 : index
    %c0_20 = arith.constant 0 : index
    %c0_21 = arith.constant 0 : index
    %37 = vector.load %arg3[%c6, %c0_20, %c0_21] : memref<9x4x16xbf16, #tpu.memory_space<vmem>>, vector<1x4x16xbf16>
    %38 = vector.shape_cast %37 : vector<1x4x16xbf16> to vector<4x16xbf16>
    %cst_22 = arith.constant dense<0.000000e+00> : vector<224x16xf32>
    %39 = tpu.matmul %36, %38, %cst_22 {dimension_numbers = #tpu.dot_dimension_numbers<[1], [0], [0], [1], [0, 0, 1, 1], [], []>} : vector<224x4xbf16>, vector<4x16xbf16>, vector<224x16xf32> -> vector<224x16xf32>
    %40 = arith.addf %35, %39 : vector<224x16xf32>
    %41 = vector.extract_strided_slice %4 {offsets = [33, 0], sizes = [224, 4], strides = [1, 1]} : vector<264x4xbf16> to vector<224x4xbf16>
    %c7 = arith.constant 7 : index
    %c0_23 = arith.constant 0 : index
    %c0_24 = arith.constant 0 : index
    %42 = vector.load %arg3[%c7, %c0_23, %c0_24] : memref<9x4x16xbf16, #tpu.memory_space<vmem>>, vector<1x4x16xbf16>
    %43 = vector.shape_cast %42 : vector<1x4x16xbf16> to vector<4x16xbf16>
    %cst_25 = arith.constant dense<0.000000e+00> : vector<224x16xf32>
    %44 = tpu.matmul %41, %43, %cst_25 {dimension_numbers = #tpu.dot_dimension_numbers<[1], [0], [0], [1], [0, 0, 1, 1], [], []>} : vector<224x4xbf16>, vector<4x16xbf16>, vector<224x16xf32> -> vector<224x16xf32>
    %45 = arith.addf %40, %44 : vector<224x16xf32>
    %46 = vector.extract_strided_slice %4 {offsets = [34, 0], sizes = [224, 4], strides = [1, 1]} : vector<264x4xbf16> to vector<224x4xbf16>
    %c8 = arith.constant 8 : index
    %c0_26 = arith.constant 0 : index
    %c0_27 = arith.constant 0 : index
    %47 = vector.load %arg3[%c8, %c0_26, %c0_27] : memref<9x4x16xbf16, #tpu.memory_space<vmem>>, vector<1x4x16xbf16>
    %48 = vector.shape_cast %47 : vector<1x4x16xbf16> to vector<4x16xbf16>
    %cst_28 = arith.constant dense<0.000000e+00> : vector<224x16xf32>
    %49 = tpu.matmul %46, %48, %cst_28 {dimension_numbers = #tpu.dot_dimension_numbers<[1], [0], [0], [1], [0, 0, 1, 1], [], []>} : vector<224x4xbf16>, vector<4x16xbf16>, vector<224x16xf32> -> vector<224x16xf32>
    %50 = arith.addf %45, %49 : vector<224x16xf32>
    %c0_29 = arith.constant 0 : index
    %c0_30 = arith.constant 0 : index
    %51 = vector.load %arg4[%c0_29, %c0_30] : memref<1x16xf32, #tpu.memory_space<vmem>>, vector<1x16xf32>
    %52 = vector.broadcast %51 : vector<1x16xf32> to vector<224x16xf32>
    %53 = arith.addf %50, %52 : vector<224x16xf32>
    %c0_31 = arith.constant 0 : index
    %54 = memref.load %arg5[%c0_31] : memref<1xf32, #tpu.memory_space<smem>>
    %cst_32 = arith.constant 0.000000e+00 : f32
    %55 = vector.broadcast %cst_32 : f32 to vector<224x16xf32>
    %56 = arith.cmpf oge, %53, %55 : vector<224x16xf32>
    %57 = vector.broadcast %54 : f32 to vector<224x16xf32>
    %58 = arith.mulf %57, %53 : vector<224x16xf32>
    %59 = arith.select %56, %53, %58 : vector<224x16xi1>, vector<224x16xf32>
    %60 = arith.truncf %59 : vector<224x16xf32> to vector<224x16xbf16>
    %c0_33 = arith.constant 0 : index
    %c0_34 = arith.constant 0 : index
    %c0_35 = arith.constant 0 : index
    %61 = vector.load %arg6[%c0_33, %c0_34, %c0_35] : memref<1x224x16xbf16, #tpu.memory_space<vmem>>, vector<1x224x16xbf16>
    %62 = vector.shape_cast %61 : vector<1x224x16xbf16> to vector<224x16xbf16>
    %63 = vector.shape_cast %60 : vector<224x16xbf16> to vector<1x224x16xbf16>
    tpu.vector_store %arg6[%c0_33, %c0_34, %c0_35], %63 {strides = array<i32>} : memref<1x224x16xbf16, #tpu.memory_space<vmem>>, vector<1x224x16xbf16>,
    return
  }
  func.func @transform_0(%arg0: i32, %arg1: i32) -> (i32, i32, i32) {
    %c0_i32 = arith.constant 0 : i32
    %c0_i32_0 = arith.constant 0 : i32
    %c0_i32_1 = arith.constant 0 : i32
    return %arg0, %c0_i32, %c0_i32_0 : i32, i32, i32
  }
  func.func @transform_1(%arg0: i32, %arg1: i32) -> (i32, i32, i32) {
    %c0_i32 = arith.constant 0 : i32
    %c0_i32_0 = arith.constant 0 : i32
    %c0_i32_1 = arith.constant 0 : i32
    %c0_i32_2 = arith.constant 0 : i32
    return %c0_i32, %c0_i32_0, %c0_i32_1 : i32, i32, i32
  }
  func.func @transform_2(%arg0: i32, %arg1: i32) -> (i32, i32) {
    %c0_i32 = arith.constant 0 : i32
    %c0_i32_0 = arith.constant 0 : i32
    %c0_i32_1 = arith.constant 0 : i32
    return %c0_i32, %c0_i32_0 : i32, i32
  }
  func.func @transform_3(%arg0: i32, %arg1: i32) -> i32 {
    %c0_i32 = arith.constant 0 : i32
    %c0_i32_0 = arith.constant 0 : i32
    return %c0_i32 : i32
  }
  func.func @transform_4(%arg0: i32, %arg1: i32) -> (i32, i32, i32) {
    %c0_i32 = arith.constant 0 : i32
    %c0_i32_0 = arith.constant 0 : i32
    return %arg0, %arg1, %c0_i32 : i32, i32, i32
  }
}

</mosaic_0001>

<bundles_post_ra>
// kernel: sub_pixel_forward.1
= control target key start
LH: loop header
LB: loop body
LE: loop exit
PB: predicated region body
PF: predicated region fallthrough
CT: control target
= control target key end

     0   :  { %s3516_s17 = smov 0   ;;  %s3518_s18 = smov 0   ;;  %s4217_s0 = inlined_call_operand.vmem [shape: bf16[2,264,4], index: 0, kind: input, shape index: {}]   ;;  %s4218_s1 = inlined_call_operand.vmem [shape: bf16[9,4,16], index: 1, kind: input, shape index: {}]   ;;  %s4219_s2 = inlined_call_operand.vmem [shape: f32[1,16], index: 2, kind: input, shape index: {}]   ;;  %s4220_s3 = inlined_call_operand.<no memory space> [shape: f32[1], index: 3, kind: input, shape index: {}]   ;;  %s4221_s4 = inlined_call_operand.vmem [shape: bf16[2,224,16], index: 4, kind: output, shape index: {}]  }
   0x1   :  { %9 = sst [smem:[#allocation2]] %s4220_s3  ;;  %s3520_s19 = smov 0  }
   0x2 LB: > { %s27_s3 = sadd.s32 1, %s3482_s18  ;;  %p2563_p0 = scmp.ge.s32.totalorder %s3486_s19, 1  ;;  %s3486_s19 = sphi %s3520_s19, %s15_s19   ;;  %s3482_s18 = sphi %s3518_s18, %s4223_s18   ;;  %s3478_s17 = sphi %s3516_s17, %s4222_s17  }
   0x3   : > { %p29_p1 = scmp.ge.s32.totalorder %s27_s3, 2  ;;  %p177_p2 = scmp.lt.s32.totalorder %s3486_s19, 3 }
   0x5   : > { %s4225_s3 = smov (%p29_p1, %s27_s3), 0  ;;  %p178_p3 = pnand %p2563_p0, %p177_p2 }
   0x6   : > { %vm497_vm0 = vcmask (!%p178_p3), 1041408   ;;  %v3537_v0 = vld [vmem:[%s4218_s1 + $0x8] sm:$0x3] (!%p178_p3)  ;;  %v2566_v1 = vld [vmem:[%s4218_s1 + $0x2] sm:$0x3] (!%p178_p3)  ;;  %p207_p4 = scmp.lt.s32.totalorder (!%p178_p3), %s3478_s17, 1 }
   0x7   : > { %181 = sbr.rel (%p178_p3) target bundleno = 500 (0x1f4), region = 36  ;;  %3413 = vmatprep.subr.msk.bf16.mxu0 (!%p178_p3), %vm497_vm0, %v3537_v0  ;;  %3409 = vmatprep.subr.msk.bf16.mxu1 (!%p178_p3), %vm497_vm0, %v2566_v1  ;;  %v3547_v2 = vsel (!%p178_p3), %vm497_vm0, %v3537_v0, 0  ;;  %v499_v3 = vsel (!%p178_p3), %vm497_vm0, %v2566_v1, 0  ;;  %v2657_v4 = vld [vmem:[%s4218_s1 + $0xa] sm:$0x3] (!%p178_p3)  ;;  %vm454_vm2 = vcmask (!%p178_p3), 31744  }
   0x8   : > { %3034 = vmatpush3.bf16.msra.mxu0 (!%p178_p3), %v3547_v2  ;;  %2914 = vmatpush3.bf16.msra.mxu1 (!%p178_p3), %v499_v3  ;;  %v261_v5 = vld [vmem:[%s4218_s1] sm:$0x3] (!%p178_p3)  ;;  %vm337_vm1 = vsmask.f32 (!%p178_p3), 7424  ;;  %v1468_v25 = vsel (!%p178_p3), %vm497_vm0, %v2657_v4, 0  ;;  %vm824_vm3 = vcmask (!%p178_p3), 1046528  }
   0x9   : > { %3415 = vmatprep.subr.msk.bf16.mxu0 (!%p178_p3), %vm497_vm0, %v2657_v4  ;;  %3410 = vmatprep.subr.msk.bf16.mxu1 (!%p178_p3), %vm497_vm0, %v261_v5  ;;  %v3606_v36 = vld [vmem:[%s4218_s1 + $0xc] sm:$0x3] (!%p178_p3)  ;;  %v675_v39 = vsel (!%p178_p3), %vm497_vm0, %v261_v5, 0  ;;  %v3624_v43 = vld [vmem:[%s4218_s1 + $0x4] sm:$0x3] (!%p178_p3)  ;;  %s2249_s16 = sld [smem:[#allocation2]] (!%p178_p3) }
   0xa   : > { %vm2447_vm6 = vcmask (!%p178_p3), 125952  }
   0xe   : > { %s4227_s17 = smov (!%p207_p4, %s3478_s17), 1 }
   0xf   : > { %s3419_s28 = smul.u32 132, %s4227_s17 }
  0x10   : > { %s3420_s22 = smul.u32 112, %s4227_s17 }
  0x11   : > { %s3565_s5 = scalar_lea.vmem %s4217_s0, %s3419_s28 }
  0x12   : > { %v3568_v6 = vld [vmem:[%s3565_s5] sm:$0xff]   ;;  %v3571_v7 = vld [vmem:[%s3565_s5 + $0x8] sm:$0xff]   ;;  %v3574_v8 = vld [vmem:[%s3565_s5 + $0x10] sm:$0xff]   ;;  %s4092_s17 = scalar_lea.vmem %s4221_s4, %s3420_s22 }
  0x13   : > { %v339_v9 = vshrl.u32 %v3568_v6, 16  ;;  %v341_v10 = vshll.u32 %v3568_v6, 16  ;;  %v346_v11 = vshll.u32 %v3571_v7, 16  ;;  %v350_v12 = vshrl.u32 %v3571_v7, 16  ;;  %v3583_v15 = vld [vmem:[%s3565_s5 + $0x18] sm:$0xff]   ;;  %v3586_v16 = vld [vmem:[%s3565_s5 + $0x20] sm:$0xff]  }
  0x14   : > { %v354_v13 = vshll.u32 %v3574_v8, 16  ;;  %v358_v14 = vshrl.u32 %v3574_v8, 16  ;;  %v362_v20 = vshll.u32 %v3583_v15, 16  ;;  %v366_v21 = vshrl.u32 %v3583_v15, 16  ;;  %v3593_v26 = vld [vmem:[%s3565_s5 + $0x28] sm:$0xff]   ;;  %v3597_v31 = vld [vmem:[%s3565_s5 + $0x30] sm:$0xff]  }
  0x15   : > { %v343_v17 = vrot.slane %v341_v10, 1  ;;  %v348_v18 = vrot.slane %v346_v11, 1  ;;  %v370_v22 = vshll.u32 %v3586_v16, 16  ;;  %v374_v30 = vshrl.u32 %v3586_v16, 16  ;;  %v3619_v42 = vld [vmem:[%s3565_s5 + $0x38] sm:$0xff]   ;;  %v3634_v48 = vld [vmem:[%s3565_s5 + $0x40] sm:$0xff]  }
  0x16   : > { %v356_v19 = vrot.slane %v354_v13, 1  ;;  %v364_v28 = vrot.slane %v362_v20, 1  ;;  %v378_v34 = vshll.u32 %v3593_v26, 16  ;;  %v382_v35 = vshrl.u32 %v3593_v26, 16  ;;  %v3659_v57 = vld [vmem:[%s3565_s5 + $0x48] sm:$0xff]   ;;  %v3674_v1 = vld [vmem:[%s3565_s5 + $0x50] sm:$0xff]  }
  0x17   : > { %v344_v23 = vor.u32 %v343_v17, %v339_v9  ;;  %v352_v24 = vor.u32 %v350_v12, %v348_v18  ;;  %v372_v29 = vrot.slane %v370_v22, 1  ;;  %v386_v40 = vshll.u32 %v3597_v31, 16  ;;  %v3683_v10 = vld [vmem:[%s3565_s5 + $0x58] sm:$0xff]   ;;  %v3688_v13 = vld [vmem:[%s3565_s5 + $0x70] sm:$0xf]  ;;  %v3703_v22 = vld [vmem:[%s3565_s5 + $0x68] sm:$0xff]  }
  0x18   : > { %v360_v27 = vor.u32 %v358_v14, %v356_v19  ;;  %v368_v38 = vor.u32 %v366_v21, %v364_v28  ;;  %v380_v41 = vrot.slane %v378_v34, 1  ;;  %v394_v49 = vshll.u32 %v3619_v42, 16 }
  0x19   : > { %v349_v32 = vsel %vm337_vm1, %v344_v23, %v348_v18  ;;  %v357_v33 = vsel %vm337_vm1, %v352_v24, %v356_v19  ;;  %v376_v45 = vor.u32 %v374_v30, %v372_v29  ;;  %v388_v47 = vrot.slane %v386_v40, 1 }
  0x1a   : > { %2915 = vmatprep.mubr.msk.bf16.mxu1 %vm454_vm2, %v349_v32  ;;  %3035 = vmatprep.mubr.msk.bf16.mxu0 %vm454_vm2, %v357_v33  ;;  %v3611_v37 = vsel %vm337_vm1, %v360_v27, %v364_v28  ;;  %v3629_v44 = vsel %vm337_vm1, %v368_v38, %v372_v29  ;;  %v384_v46 = vor.u32 %v382_v35, %v380_v41  ;;  %v390_v51 = vshrl.u32 %v3597_v31, 16 }
  0x1b   : > { %2916 = vmatmul.mubr.msk.bf16.vlgmr.msra.gmra.mrb[0].mxu1 %vm454_vm2, %v357_v33  ;;  %3036 = vmatmul.mubr.msk.bf16.vlgmr.msra.gmra.mrb[0].mxu0 %vm454_vm2, %v3611_v37  ;;  %v3642_v50 = vsel %vm337_vm1, %v376_v45, %v380_v41  ;;  %v398_v53 = vshrl.u32 %v3619_v42, 16  ;;  %v402_v54 = vshll.u32 %v3634_v48, 16  ;;  %v396_v55 = vrot.slane %v394_v49, 1 }
  0x1c   : > { %3064 = vmatpush3.bf16.msra.mxu0 %v1468_v25  ;;  %2919 = vmatprep.mubr.msk.bf16.mxu1 %vm454_vm2, %v3611_v37  ;;  %v3646_v52 = vsel %vm337_vm1, %v384_v46, %v388_v47  ;;  %v392_v56 = vor.u32 %v390_v51, %v388_v47  ;;  %v406_v61 = vshrl.u32 %v3634_v48, 16  ;;  %v410_v62 = vshll.u32 %v3659_v57, 16  ;;  %v3712_v25 = vld [vmem:[%s3565_s5 + $0x60] sm:$0xff]  }
  0x1d   : > { %3039 = vmatprep.mubr.msk.bf16.mxu0 %vm454_vm2, %v3629_v44  ;;  %2944 = vmatpush3.bf16.msra.mxu1 %v675_v39  ;;  %v400_v58 = vor.u32 %v398_v53, %v396_v55  ;;  %v404_v59 = vrot.slane %v402_v54, 1  ;;  %v826_v5 = vrot.slane %v3571_v7, 1  ;;  %v828_v9 = vrot.slane %v3574_v8, 1  ;;  %v3748_v53 = vld [vmem:[%s4218_s1 + $0xe] sm:$0x3] }
  0x1e   : > { %3416 = vmatprep.subr.msk.bf16.mxu0 %vm497_vm0, %v3606_v36  ;;  %3411 = vmatprep.subr.msk.bf16.mxu1 %vm497_vm0, %v3624_v43  ;;  %v3662_v60 = vsel %vm337_vm1, %v392_v56, %v396_v55  ;;  %v412_v4 = vrot.slane %v410_v62, 1  ;;  %v825_v11 = vrot.slane %v3568_v6, 1  ;;  %v418_v12 = vshll.u32 %v3674_v1, 16 }
  0x1f   : > { %v3667_v63 = vsel %vm337_vm1, %v400_v58, %v404_v59  ;;  %v408_v3 = vor.u32 %v406_v61, %v404_v59  ;;  %v414_v18 = vshrl.u32 %v3659_v57, 16  ;;  %v3698_v19 = vsel %vm824_vm3, %v826_v5, %v828_v9 }
  0x20   : > { %v3691_v14 = vsel %vm824_vm3, %v825_v11, %v826_v5  ;;  %v422_v20 = vshrl.u32 %v3674_v1, 16  ;;  %v426_v21 = vshll.u32 %v3683_v10, 16  ;;  %v2581_v23 = vcombine.low %v3688_v13, %v3688_v13 }
  0x21   : > { %v3694_v17 = vsel %vm337_vm1, %v408_v3, %v412_v4  ;;  %v420_v24 = vrot.slane %v418_v12, 1  ;;  %v416_v27 = vor.u32 %v414_v18, %v412_v4  ;;  %v830_v28 = vrot.slane %v3583_v15, 1 }
  0x22   : > { %v3720_v29 = vrot.slane %v3703_v22, 1  ;;  %v852_v30 = vrot.slane %v2581_v23, 1  ;;  %v428_v33 = vrot.slane %v426_v21, 1  ;;  %v832_v34 = vrot.slane %v3586_v16, 1 }
  0x23   : > { %2920 = vmatmul.mubr.msk.bf16.gmra.mrb[4].mxu1 %vm454_vm2, %v3629_v44  ;;  %3040 = vmatmul.mubr.msk.bf16.gmra.mrb[4].mxu0 %vm454_vm2, %v3642_v50  ;;  %v424_v32 = vor.u32 %v422_v20, %v420_v24  ;;  %v434_v38 = vshll.u32 %v3712_v25, 16  ;;  %v3729_v39 = vsel %vm337_vm1, %v416_v27, %v420_v24  ;;  %v3732_v40 = vsel %vm824_vm3, %v828_v9, %v830_v28 }
  0x24   : > { %2923 = vmatprep.mubr.msk.bf16.mxu1 %vm454_vm2, %v3642_v50  ;;  %3043 = vmatprep.mubr.msk.bf16.mxu0 %vm454_vm2, %v3646_v52  ;;  %v3725_v35 = vsel %vm824_vm3, %v3720_v29, %v852_v30  ;;  %v430_v41 = vshrl.u32 %v3683_v10, 16  ;;  %v1652_v45 = vsel %vm497_vm0, %v3606_v36, 0  ;;  %v438_v47 = vshrl.u32 %v3712_v25, 16 }
  0x25   : > { %v3738_v46 = vsel %vm337_vm1, %v424_v32, %v428_v33  ;;  %v442_v49 = vshll.u32 %v3703_v22, 16  ;;  %v3743_v51 = vsel %vm824_vm3, %v830_v28, %v832_v34  ;;  %v436_v36 = vrot.slane %v434_v38, 1  ;;  %v257_v38 = vld [vmem:[%s3565_s5 + $0x74] sm:$0xf] }
  0x26   : > { %v432_v54 = vor.u32 %v430_v41, %v428_v33  ;;  %v834_v55 = vrot.slane %v3593_v26, 1  ;;  %v836_v59 = vrot.slane %v3597_v31, 1  ;;  %v446_v3 = vshrl.u32 %v3703_v22, 16 }
  0x27   : > { %v440_v56 = vor.u32 %v438_v47, %v436_v36  ;;  %v444_v58 = vrot.slane %v442_v49, 1  ;;  %v450_v4 = vshll.u32 %v2581_v23, 16  ;;  %v838_v18 = vrot.slane %v3619_v42, 1 }
  0x28   : > { %v3763_v61 = vsel %vm337_vm1, %v432_v54, %v436_v36  ;;  %v3766_v62 = vsel %vm824_vm3, %v832_v34, %v834_v55  ;;  %v3773_v9 = vsel %vm824_vm3, %v834_v55, %v836_v59  ;;  %v840_v20 = vrot.slane %v3634_v48, 1 }
  0x29   : > { %v3770_v5 = vsel %vm337_vm1, %v440_v56, %v444_v58  ;;  %v3783_v11 = vor.u32 %v446_v3, %v444_v58  ;;  %v452_v12 = vrot.slane %v450_v4, 1  ;;  %v3790_v23 = vsel %vm824_vm3, %v836_v59, %v838_v18  ;;  %v2704_v59 = vld [vmem:[%s4218_s1 + $0x10] sm:$0x3] }
  0x2a   : > { %v3793_v24 = vsel %vm824_vm3, %v838_v18, %v840_v20  ;;  %v842_v27 = vrot.slane %v3659_v57, 1  ;;  %v844_v28 = vrot.slane %v3674_v1, 1  ;;  %v897_v33 = vsel %vm497_vm0, %v3624_v43, 0 }
  0x2b   : > { %2924 = vmatmul.mubr.msk.bf16.gmra.mrb[8].mxu1 %vm454_vm2, %v3646_v52  ;;  %3044 = vmatmul.mubr.msk.bf16.gmra.mrb[8].mxu0 %vm454_vm2, %v3662_v60  ;;  %v453_v21 = vsel %vm337_vm1, %v3783_v11, %v452_v12  ;;  %v846_v34 = vrot.slane %v3683_v10, 1  ;;  %v848_v43 = vrot.slane %v3712_v25, 1 }
  0x2c   : > { %2927 = vmatprep.mubr.msk.bf16.mxu1 %vm454_vm2, %v3662_v60  ;;  %3047 = vmatprep.mubr.msk.bf16.mxu0 %vm454_vm2, %v3667_v63  ;;  %v3805_v30 = vsel %vm824_vm3, %v840_v20, %v842_v27  ;;  %v3808_v32 = vsel %vm824_vm3, %v842_v27, %v844_v28 }
  0x2d   : > { %v3828_v41 = vsel %vm824_vm3, %v844_v28, %v846_v34  ;;  %v3834_v47 = vsel %vm824_vm3, %v846_v34, %v848_v43  ;;  %v3850_v36 = vsel %vm824_vm3, %v848_v43, %v3720_v29 }
  0x33   : > { %2928 = vmatmul.mubr.msk.bf16.gmra.mrb[12].mxu1 %vm454_vm2, %v3667_v63  ;;  %3048 = vmatmul.mubr.msk.bf16.gmra.mrb[12].mxu0 %vm454_vm2, %v3694_v17 }
  0x34   : > { %2931 = vmatprep.mubr.msk.bf16.mxu1 %vm454_vm2, %v3694_v17  ;;  %3065 = vmatprep.mubr.msk.bf16.mxu0 %vm454_vm2, %v3698_v19 }
  0x3b   : > { %2932 = vmatmul.mubr.msk.bf16.gmra.mrb[16].mxu1 %vm454_vm2, %v3729_v39  ;;  %3066 = vmatmul.mubr.msk.bf16.vlgmr.msra.gmra.mrb[0].mxu0 %vm454_vm2, %v3732_v40 }
  0x3c   : > { %3094 = vmatpush3.bf16.msra.mxu0 %v1652_v45  ;;  %2935 = vmatprep.mubr.msk.bf16.mxu1 %vm454_vm2, %v3738_v46  ;;  %v3831_v45 = vcombine.low %v3688_v13, %v257_v38  ;;  %v258_v13 = vld [vmem:[%s3565_s5 + $0x78] sm:$0xf] }
  0x3d   : > { %3069 = vmatprep.mubr.msk.bf16.mxu0 %vm454_vm2, %v3743_v51  ;;  %3417 = vmatprep.subr.msk.bf16.mxu0 %vm497_vm0, %v3748_v53  ;;  %v3852_v54 = vcombine.low %v258_v13, %v258_v13 }
  0x3e   : > { %v3845_v49 = vrot.slane %v3831_v45, 1 }
  0x3f   : > { %v1459_v56 = vrot.slane %v3852_v54, 1 }
  0x40   : > { %v3857_v55 = vsel %vm824_vm3, %v3720_v29, %v3845_v49  ;;  %v1851_v29 = vsel %vm497_vm0, %v3748_v53, 0 }
  0x41   : > { %v1460_v58 = vsel %vm824_vm3, %v3845_v49, %v1459_v56 }
  0x43   : > { %2936 = vmatmul.mubr.msk.bf16.gmra.mrb[20].mxu1 %vm454_vm2, %v3763_v61  ;;  %3070 = vmatmul.mubr.msk.bf16.gmra.mrb[4].mxu0 %vm454_vm2, %v3766_v62 }
  0x44   : > { %2939 = vmatprep.mubr.msk.bf16.mxu1 %vm454_vm2, %v3770_v5  ;;  %3073 = vmatprep.mubr.msk.bf16.mxu0 %vm454_vm2, %v3773_v9 }
  0x4b   : > { %2940 = vmatmul.mubr.msk.bf16.gmra.mrb[24].mxu1 %vm454_vm2, %v453_v21  ;;  %3074 = vmatmul.mubr.msk.bf16.gmra.mrb[8].mxu0 %vm454_vm2, %v3790_v23 }
  0x4c   : > { %2945 = vmatprep.mubr.msk.bf16.mxu1 %vm454_vm2, %v3568_v6  ;;  %3077 = vmatprep.mubr.msk.bf16.mxu0 %vm454_vm2, %v3793_v24  ;;  %v2625_v6 = vld [vmem:[%s4218_s1 + $0x6] sm:$0x3] }
  0x4d   : > { %v1081_v53 = vsel %vm497_vm0, %v2625_v6, 0 }
  0x53   : > { %2946 = vmatmul.mubr.msk.bf16.vlgmr.msra.gmra.mrb[0].mxu1 %vm454_vm2, %v3571_v7  ;;  %3078 = vmatmul.mubr.msk.bf16.gmra.mrb[12].mxu0 %vm454_vm2, %v3805_v30 }
  0x54   : > { %2949 = vmatprep.mubr.msk.bf16.mxu1 %vm454_vm2, %v3574_v8  ;;  %3081 = vmatprep.mubr.msk.bf16.mxu0 %vm454_vm2, %v3808_v32 }
  0x55   : > { %2974 = vmatpush3.bf16.msra.mxu1 %v897_v33 }
  0x56   : > { %3412 = vmatprep.subr.msk.bf16.mxu1 %vm497_vm0, %v2625_v6 }
  0x5b   : > { %2950 = vmatmul.mubr.msk.bf16.gmra.mrb[4].mxu1 %vm454_vm2, %v3583_v15  ;;  %3082 = vmatmul.mubr.msk.bf16.gmra.mrb[16].mxu0 %vm454_vm2, %v3828_v41 }
  0x5c   : > { %2953 = vmatprep.mubr.msk.bf16.mxu1 %vm454_vm2, %v3586_v16  ;;  %3085 = vmatprep.mubr.msk.bf16.mxu0 %vm454_vm2, %v3834_v47 }
  0x63   : > { %2954 = vmatmul.mubr.msk.bf16.gmra.mrb[8].mxu1 %vm454_vm2, %v3593_v26  ;;  %3086 = vmatmul.mubr.msk.bf16.gmra.mrb[20].mxu0 %vm454_vm2, %v3850_v36 }
  0x64   : > { %2957 = vmatprep.mubr.msk.bf16.mxu1 %vm454_vm2, %v3597_v31  ;;  %3089 = vmatprep.mubr.msk.bf16.mxu0 %vm454_vm2, %v3857_v55 }
  0x6b   : > { %2958 = vmatmul.mubr.msk.bf16.gmra.mrb[12].mxu1 %vm454_vm2, %v3619_v42  ;;  %3090 = vmatmul.mubr.msk.bf16.gmra.mrb[24].mxu0 %vm454_vm2, %v1460_v58 }
  0x6c   : > { %2961 = vmatprep.mubr.msk.bf16.mxu1 %vm454_vm2, %v3634_v48  ;;  %3095 = vmatprep.mubr.msk.bf16.mxu0 %vm454_vm2, %v3574_v8 }
  0x73   : > { %2962 = vmatmul.mubr.msk.bf16.gmra.mrb[16].mxu1 %vm454_vm2, %v3659_v57  ;;  %3096 = vmatmul.mubr.msk.bf16.vlgmr.msra.gmra.mrb[0].mxu0 %vm454_vm2, %v3583_v15 }
  0x74   : > { %3124 = vmatpush3.bf16.msra.mxu0 %v1851_v29  ;;  %2965 = vmatprep.mubr.msk.bf16.mxu1 %vm454_vm2, %v3674_v1 }
  0x75   : > { %3099 = vmatprep.mubr.msk.bf16.mxu0 %vm454_vm2, %v3586_v16  ;;  %3418 = vmatprep.subr.msk.bf16.mxu0 %vm497_vm0, %v2704_v59 }
  0x7b   : > { %2966 = vmatmul.mubr.msk.bf16.gmra.mrb[20].mxu1 %vm454_vm2, %v3683_v10  ;;  %3100 = vmatmul.mubr.msk.bf16.gmra.mrb[4].mxu0 %vm454_vm2, %v3593_v26 }
  0x7c   : > { %2969 = vmatprep.mubr.msk.bf16.mxu1 %vm454_vm2, %v3712_v25  ;;  %3103 = vmatprep.mubr.msk.bf16.mxu0 %vm454_vm2, %v3597_v31 }
  0x83   : > { %2970 = vmatmul.mubr.msk.bf16.gmra.mrb[24].mxu1 %vm454_vm2, %v3703_v22  ;;  %3104 = vmatmul.mubr.msk.bf16.gmra.mrb[8].mxu0 %vm454_vm2, %v3619_v42 }
  0x84   : > { %2975 = vmatprep.mubr.msk.bf16.mxu1 %vm454_vm2, %v3691_v14  ;;  %3107 = vmatprep.mubr.msk.bf16.mxu0 %vm454_vm2, %v3634_v48 }
  0x8b   : > { %2976 = vmatmul.mubr.msk.bf16.vlgmr.msra.gmra.mrb[0].mxu1 %vm454_vm2, %v3698_v19  ;;  %3108 = vmatmul.mubr.msk.bf16.gmra.mrb[12].mxu0 %vm454_vm2, %v3659_v57  ;;  %v2039_v19 = vsel %vm497_vm0, %v2704_v59, 0 }
  0x8c   : > { %2979 = vmatprep.mubr.msk.bf16.mxu1 %vm454_vm2, %v3732_v40  ;;  %3111 = vmatprep.mubr.msk.bf16.mxu0 %vm454_vm2, %v3674_v1 }
  0x8d   : > { %3004 = vmatpush3.bf16.msra.mxu1 %v1081_v53 }
  0x8e   : > { %3414 = vmatprep.subr.msk.bf16.mxu1 %vm497_vm0, %v3537_v0  ;;  %v259_v0 = vld [vmem:[%s3565_s5 + $0x7c] sm:$0xf] }
  0x8f   : > { %v3935_v14 = vcombine.low %v258_v13, %v259_v0 }
  0x93   : > { %2980 = vmatmul.mubr.msk.bf16.gmra.mrb[4].mxu1 %vm454_vm2, %v3743_v51  ;;  %3112 = vmatmul.mubr.msk.bf16.gmra.mrb[16].mxu0 %vm454_vm2, %v3683_v10 }
  0x94   : > { %2983 = vmatprep.mubr.msk.bf16.mxu1 %vm454_vm2, %v3766_v62  ;;  %3115 = vmatprep.mubr.msk.bf16.mxu0 %vm454_vm2, %v3712_v25 }
  0x9b   : > { %2984 = vmatmul.mubr.msk.bf16.gmra.mrb[8].mxu1 %vm454_vm2, %v3773_v9  ;;  %3116 = vmatmul.mubr.msk.bf16.gmra.mrb[20].mxu0 %vm454_vm2, %v3703_v22 }
  0x9c   : > { %2987 = vmatprep.mubr.msk.bf16.mxu1 %vm454_vm2, %v3790_v23  ;;  %3119 = vmatprep.mubr.msk.bf16.mxu0 %vm454_vm2, %v3831_v45 }
  0xa3   : > { %2988 = vmatmul.mubr.msk.bf16.gmra.mrb[12].mxu1 %vm454_vm2, %v3793_v24  ;;  %3120 = vmatmul.mubr.msk.bf16.gmra.mrb[24].mxu0 %vm454_vm2, %v3935_v14 }
  0xa4   : > { %2991 = vmatprep.mubr.msk.bf16.mxu1 %vm454_vm2, %v3805_v30  ;;  %3125 = vmatprep.mubr.msk.bf16.mxu0 %vm454_vm2, %v3611_v37  ;;  %v1261_v37 = vshll.u32 %v3831_v45, 16 }
  0xab   : > { %2992 = vmatmul.mubr.msk.bf16.gmra.mrb[16].mxu1 %vm454_vm2, %v3808_v32  ;;  %3126 = vmatmul.mubr.msk.bf16.vlgmr.msra.gmra.mrb[0].mxu0 %vm454_vm2, %v3629_v44  ;;  %v1832_v44 = vshll.u32 %v3935_v14, 16 }
  0xac   : > { %3154 = vmatpush3.bf16.msra.mxu0 %v2039_v19  ;;  %2995 = vmatprep.mubr.msk.bf16.mxu1 %vm454_vm2, %v3828_v41 }
  0xad   : > { %3129 = vmatprep.mubr.msk.bf16.mxu0 %vm454_vm2, %v3642_v50  ;;  %v1834_v50 = vrot.slane %v1832_v44, 1 }
  0xb3   : > { %2996 = vmatmul.mubr.msk.bf16.gmra.mrb[20].mxu1 %vm454_vm2, %v3834_v47  ;;  %3130 = vmatmul.mubr.msk.bf16.gmra.mrb[4].mxu0 %vm454_vm2, %v3646_v52 }
  0xb4   : > { %2999 = vmatprep.mubr.msk.bf16.mxu1 %vm454_vm2, %v3850_v36  ;;  %3133 = vmatprep.mubr.msk.bf16.mxu0 %vm454_vm2, %v3662_v60  ;;  %v1836_v60 = vshrl.u32 %v3935_v14, 16 }
  0xbb   : > { %3000 = vmatmul.mubr.msk.bf16.gmra.mrb[24].mxu1 %vm454_vm2, %v3725_v35  ;;  %3134 = vmatmul.mubr.msk.bf16.gmra.mrb[8].mxu0 %vm454_vm2, %v3667_v63 }
  0xbc   : > { %3005 = vmatprep.mubr.msk.bf16.mxu1 %vm454_vm2, %v3571_v7  ;;  %3137 = vmatprep.mubr.msk.bf16.mxu0 %vm454_vm2, %v3694_v17  ;;  %v1265_v7 = vshrl.u32 %v3831_v45, 16 }
  0xc3   : > { %3006 = vmatmul.mubr.msk.bf16.vlgmr.msra.gmra.mrb[0].mxu1 %vm454_vm2, %v3574_v8  ;;  %3138 = vmatmul.mubr.msk.bf16.gmra.mrb[12].mxu0 %vm454_vm2, %v3729_v39  ;;  %v1263_v8 = vrot.slane %v1261_v37, 1 }
  0xc4   : > { %3009 = vmatprep.mubr.msk.bf16.mxu1 %vm454_vm2, %v3583_v15  ;;  %3141 = vmatprep.mubr.msk.bf16.mxu0 %vm454_vm2, %v3738_v46 }
  0xc5   : > { %3184 = vmatpush3.bf16.msra.mxu1 %v3547_v2  ;;  %v3463_v2 = vld [vmem:[%s3565_s5 + $0x80] ss:$0 sps:$4 sm:$0xff]   ;;  %v1267_v15 = vor.u32 %v1265_v7, %v1263_v8  ;;  %v1264_v52 = vsel %vm337_vm1, %v3783_v11, %v1263_v8 }
  0xc6   : > { %v1840_v63 = vshll.u32 %v3463_v2, 16 }
  0xc8   : > { %v1842_v17 = vrot.slane %v1840_v63, 1 }
  0xcb   : > { %3010 = vmatmul.mubr.msk.bf16.gmra.mrb[4].mxu1 %vm454_vm2, %v3586_v16  ;;  %3142 = vmatmul.mubr.msk.bf16.gmra.mrb[16].mxu0 %vm454_vm2, %v3763_v61  ;;  %v1835_v16 = vsel %vm337_vm1, %v1267_v15, %v1834_v50 }
  0xcc   : > { %3013 = vmatprep.mubr.msk.bf16.mxu1 %vm454_vm2, %v3593_v26  ;;  %3145 = vmatprep.mubr.msk.bf16.mxu0 %vm454_vm2, %v3770_v5  ;;  %v1838_v26 = vor.u32 %v1836_v60, %v1834_v50 }
  0xce   : > { %v1843_v35 = vsel %vm337_vm1, %v1838_v26, %v1842_v17 }
  0xd3   : > { %3014 = vmatmul.mubr.msk.bf16.gmra.mrb[8].mxu1 %vm454_vm2, %v3597_v31  ;;  %3146 = vmatmul.mubr.msk.bf16.gmra.mrb[20].mxu0 %vm454_vm2, %v1264_v52  ;;  %v1269_v31 = vshll.u32 %v3852_v54, 16 }
  0xd4   : > { %3017 = vmatprep.mubr.msk.bf16.mxu1 %vm454_vm2, %v3619_v42  ;;  %3149 = vmatprep.mubr.msk.bf16.mxu0 %vm454_vm2, %v1835_v16 }
  0xd5   : > { %v1271_v42 = vrot.slane %v1269_v31, 1 }
  0xdb   : > { %3018 = vmatmul.mubr.msk.bf16.gmra.mrb[12].mxu1 %vm454_vm2, %v3634_v48  ;;  %3150 = vmatmul.mubr.msk.bf16.gmra.mrb[24].mxu0 %vm454_vm2, %v1843_v35  ;;  %v2028_v48 = vrot.slane %v3935_v14, 1 }
  0xdc   : > { %3021 = vmatprep.mubr.msk.bf16.mxu1 %vm454_vm2, %v3659_v57  ;;  %3155 = vmatprep.mubr.msk.bf16.mxu0 %vm454_vm2, %v3732_v40  ;;  %v1272_v57 = vsel %vm337_vm1, %v1267_v15, %v1271_v42 }
  0xe3   : > { %3022 = vmatmul.mubr.msk.bf16.gmra.mrb[16].mxu1 %vm454_vm2, %v3674_v1  ;;  %3156 = vmatmul.mubr.msk.bf16.vlgmr.msra.gmra.mrb[0].mxu0 %vm454_vm2, %v3743_v51  ;;  %v2029_v1 = vsel %vm824_vm3, %v3845_v49, %v2028_v48 }
  0xe4   : > { %3025 = vmatprep.mubr.msk.bf16.mxu1 %vm454_vm2, %v3683_v10  ;;  %3159 = vmatprep.mubr.msk.bf16.mxu0 %vm454_vm2, %v3766_v62  ;;  %v2030_v10 = vrot.slane %v3463_v2, 1 }
  0xeb   : > { %3026 = vmatmul.mubr.msk.bf16.gmra.mrb[20].mxu1 %vm454_vm2, %v3712_v25  ;;  %3160 = vmatmul.mubr.msk.bf16.gmra.mrb[4].mxu0 %vm454_vm2, %v3773_v9 }
  0xec   : > { %3029 = vmatprep.mubr.msk.bf16.mxu1 %vm454_vm2, %v3703_v22  ;;  %3163 = vmatprep.mubr.msk.bf16.mxu0 %vm454_vm2, %v3790_v23  ;;  %v2031_v22 = vsel %vm824_vm3, %v2028_v48, %v2030_v10 }
  0xf3   : > { %3030 = vmatmul.mubr.msk.bf16.gmra.mrb[24].mxu1 %vm454_vm2, %v3831_v45  ;;  %3164 = vmatmul.mubr.msk.bf16.gmra.mrb[8].mxu0 %vm454_vm2, %v3793_v24  ;;  %v4078_v24 = vld [vmem:[%s4219_s2] ss:$0 sm:$0xff] }
  0xf4   : > { %3051 = vmatprep.mubr.msk.bf16.mxu1 %vm454_vm2, %v3729_v39  ;;  %3167 = vmatprep.mubr.msk.bf16.mxu0 %vm454_vm2, %v3805_v30  ;;  %v4080_v30 = vstv %s2249_s16 }
  0xfb   : > { %3052 = vmatmul.mubr.msk.bf16.vlgmr.msra.gmra.mrb[16].mxu1 %vm454_vm2, %v3738_v46  ;;  %3168 = vmatmul.mubr.msk.bf16.gmra.mrb[12].mxu0 %vm454_vm2, %v3808_v32 }
  0xfc   : > { %3055 = vmatprep.mubr.msk.bf16.mxu1 %vm454_vm2, %v3763_v61  ;;  %3171 = vmatprep.mubr.msk.bf16.mxu0 %vm454_vm2, %v3828_v41 }
 0x103   : > { %3056 = vmatmul.mubr.msk.bf16.gmra.mrb[20].mxu1 %vm454_vm2, %v3770_v5  ;;  %3172 = vmatmul.mubr.msk.bf16.gmra.mrb[16].mxu0 %vm454_vm2, %v3834_v47 }
 0x104   : > { %3059 = vmatprep.mubr.msk.bf16.mxu1 %vm454_vm2, %v1264_v52  ;;  %3175 = vmatprep.mubr.msk.bf16.mxu0 %vm454_vm2, %v3850_v36 }
 0x10b   : > { %3060 = vmatmul.mubr.msk.bf16.gmra.mrb[24].mxu1 %vm454_vm2, %v1272_v57  ;;  %3176 = vmatmul.mubr.msk.bf16.gmra.mrb[20].mxu0 %vm454_vm2, %v3857_v55 }
 0x10c   : > { %3179 = vmatprep.mubr.msk.bf16.mxu0 %vm454_vm2, %v2029_v1 }
 0x113   : > { %3180 = vmatmul.mubr.msk.bf16.gmra.mrb[24].mxu0 %vm454_vm2, %v2031_v22 }
 0x196   : > { %v3007_v25 = vpop.f32.mrb[0].mxu1 }
 0x197   : > { %v1117_v39 = vpop.f32.mrb[1].mxu1 }
 0x198   : > { %v3008_v40 = vpop.f32.mrb[2].mxu1 }
 0x199   : > { %v1120_v46 = vpop.f32.mrb[3].mxu1 }
 0x19e   : > { %v3011_v51 = vpop.f32.mrb[4].mxu1 }
 0x19f   : > { %v1133_v61 = vpop.f32.mrb[5].mxu1 }
 0x1a0   : > { %v3012_v62 = vpop.f32.mrb[6].mxu1 }
 0x1a1   : > { %v1136_v3 = vpop.f32.mrb[7].mxu1 }
 0x1a6   : > { %v4059_v4 = vpop.f32.mrb[8].mxu1 }
 0x1a7   : > { %v4061_v5 = vpop.f32.mrb[9].mxu1 }
 0x1a8   : > { %v4063_v9 = vpop.f32.mrb[10].mxu1 }
 0x1a9   : > { %v4065_v11 = vpop.f32.mrb[11].mxu1 }
 0x1ae   : > { %v4067_v12 = vpop.f32.mrb[12].mxu1 }
 0x1af   : > { %v4069_v18 = vpop.f32.mrb[13].mxu1 }
 0x1b0   : > { %v4071_v20 = vpop.f32.mrb[14].mxu1 }
 0x1b1   : > { %v4073_v21 = vpop.f32.mrb[15].mxu1 }
 0x1b6   : > { %v3157_v23 = vpop.f32.mrb[0].mxu0 }
 0x1b7   : > { %v3185_v27 = vadd.f32 %v3157_v23, %v3007_v25  ;;  %v2075_v28 = vpop.f32.mrb[1].mxu0 }
 0x1b8   : > { %v3186_v32 = vadd.f32 %v2075_v28, %v1117_v39  ;;  %v3158_v33 = vpop.f32.mrb[2].mxu0 }
 0x1b9   : > { %v2223_v6 = vadd.f32 %v3185_v27, %v4078_v24  ;;  %v3187_v34 = vadd.f32 %v3158_v33, %v3008_v40  ;;  %v2078_v43 = vpop.f32.mrb[3].mxu0 }
 0x1ba   : > { %v2221_v38 = vadd.f32 %v3186_v32, %v4078_v24  ;;  %v3188_v41 = vadd.f32 %v2078_v43, %v1120_v46 }
 0x1bb   : > { %vm2252_vm4 = vcmp.ge.f32.partialorder %v2223_v6, 0.0  ;;  %v2281_v45 = vmul.f32 %v4080_v30, %v2223_v6  ;;  %v2224_v47 = vadd.f32 %v3187_v34, %v4078_v24 }
 0x1bc   : > { %vm2250_vm5 = vcmp.ge.f32.partialorder %v2221_v38, 0.0  ;;  %v2279_v49 = vmul.f32 %v4080_v30, %v2221_v38  ;;  %v2222_v13 = vadd.f32 %v3188_v41, %v4078_v24 }
 0x1bd   : > { %v2309_v36 = vsel %vm2252_vm4, %v2223_v6, %v2281_v45  ;;  %vm2253_vm7 = vcmp.ge.f32.partialorder %v2224_v47, 0.0  ;;  %v2282_v54 = vmul.f32 %v4080_v30, %v2224_v47 }
 0x1be   : > { %v2752_v55 = vpack.c.bf16 %v2309_v36, %v2309_v36  ;;  %v2307_v56 = vsel %vm2250_vm5, %v2221_v38, %v2279_v49  ;;  %vm2251_vm8 = vcmp.ge.f32.partialorder %v2222_v13, 0.0  ;;  %v2280_v58 = vmul.f32 %v4080_v30, %v2222_v13  ;;  %v3161_v29 = vpop.f32.mrb[4].mxu0 }
 0x1bf   : > { %v2750_v59 = vpack.c.bf16 %v2307_v56, %v2307_v56  ;;  %v2310_v53 = vsel %vm2253_vm7, %v2224_v47, %v2282_v54  ;;  %v3189_v0 = vadd.f32 %v3161_v29, %v3011_v51  ;;  %v2091_v14 = vpop.f32.mrb[5].mxu0 }
 0x1c0   : > { %2450 = vst.msk [vmem:[%s4092_s17 + $0x8] sm:$0xf] %vm2447_vm6, %v2752_v55  ;;  %v2753_v19 = vpack.c.bf16 %v2310_v53, %v2310_v53  ;;  %v2308_v37 = vsel %vm2251_vm8, %v2222_v13, %v2280_v58  ;;  %v3190_v7 = vadd.f32 %v2091_v14, %v1133_v61  ;;  %v3162_v44 = vpop.f32.mrb[6].mxu0 }
 0x1c1   : > { %2448 = vst.msk [vmem:[%s4092_s17] sm:$0xf] %vm2447_vm6, %v2750_v59  ;;  %v2751_v8 = vpack.c.bf16 %v2308_v37, %v2308_v37  ;;  %v2227_v2 = vadd.f32 %v3189_v0, %v4078_v24  ;;  %v3191_v15 = vadd.f32 %v3162_v44, %v3012_v62  ;;  %v2094_v50 = vpop.f32.mrb[7].mxu0 }
 0x1c2   : > { %2451 = vst.msk [vmem:[%s4092_s17 + $0xc] sm:$0xf] %vm2447_vm6, %v2753_v19  ;;  %v2225_v52 = vadd.f32 %v3190_v7, %v4078_v24  ;;  %v3192_v60 = vadd.f32 %v2094_v50, %v1136_v3 }
 0x1c3   : > { %2449 = vst.msk [vmem:[%s4092_s17 + $0x4] sm:$0xf] %vm2447_vm6, %v2751_v8  ;;  %vm2256_vm9 = vcmp.ge.f32.partialorder %v2227_v2, 0.0  ;;  %v2285_v63 = vmul.f32 %v4080_v30, %v2227_v2  ;;  %v2228_v16 = vadd.f32 %v3191_v15, %v4078_v24 }
 0x1c4   : > { %vm2254_vm10 = vcmp.ge.f32.partialorder %v2225_v52, 0.0  ;;  %v2283_v26 = vmul.f32 %v4080_v30, %v2225_v52  ;;  %v2226_v17 = vadd.f32 %v3192_v60, %v4078_v24 }
 0x1c5   : > { %v2313_v35 = vsel %vm2256_vm9, %v2227_v2, %v2285_v63  ;;  %vm2257_vm11 = vcmp.ge.f32.partialorder %v2228_v16, 0.0  ;;  %v2286_v31 = vmul.f32 %v4080_v30, %v2228_v16 }
 0x1c6   : > { %v2756_v42 = vpack.c.bf16 %v2313_v35, %v2313_v35  ;;  %v2311_v48 = vsel %vm2254_vm10, %v2225_v52, %v2283_v26  ;;  %vm2255_vm12 = vcmp.ge.f32.partialorder %v2226_v17, 0.0  ;;  %v2284_v57 = vmul.f32 %v4080_v30, %v2226_v17  ;;  %v3165_v1 = vpop.f32.mrb[8].mxu0 }
 0x1c7   : > { %v2754_v10 = vpack.c.bf16 %v2311_v48, %v2311_v48  ;;  %v2314_v22 = vsel %vm2257_vm11, %v2228_v16, %v2286_v31  ;;  %v3193_v25 = vadd.f32 %v3165_v1, %v4059_v4  ;;  %v2107_v39 = vpop.f32.mrb[9].mxu0 }
 0x1c8   : > { %2454 = vst.msk [vmem:[%s4092_s17 + $0x18] sm:$0xf] %vm2447_vm6, %v2756_v42  ;;  %v2757_v40 = vpack.c.bf16 %v2314_v22, %v2314_v22  ;;  %v2312_v46 = vsel %vm2255_vm12, %v2226_v17, %v2284_v57  ;;  %v3194_v51 = vadd.f32 %v2107_v39, %v4061_v5  ;;  %v3166_v61 = vpop.f32.mrb[10].mxu0 }
 0x1c9   : > { %2452 = vst.msk [vmem:[%s4092_s17 + $0x10] sm:$0xf] %vm2447_vm6, %v2754_v10  ;;  %v2755_v62 = vpack.c.bf16 %v2312_v46, %v2312_v46  ;;  %v2231_v3 = vadd.f32 %v3193_v25, %v4078_v24  ;;  %v3195_v23 = vadd.f32 %v3166_v61, %v4063_v9  ;;  %v2110_v27 = vpop.f32.mrb[11].mxu0 }
 0x1ca   : > { %2455 = vst.msk [vmem:[%s4092_s17 + $0x1c] sm:$0xf] %vm2447_vm6, %v2757_v40  ;;  %v2229_v4 = vadd.f32 %v3194_v51, %v4078_v24  ;;  %v3196_v28 = vadd.f32 %v2110_v27, %v4065_v11 }
 0x1cb   : > { %2453 = vst.msk [vmem:[%s4092_s17 + $0x14] sm:$0xf] %vm2447_vm6, %v2755_v62  ;;  %vm2260_vm13 = vcmp.ge.f32.partialorder %v2231_v3, 0.0  ;;  %v2289_v5 = vmul.f32 %v4080_v30, %v2231_v3  ;;  %v2232_v32 = vadd.f32 %v3195_v23, %v4078_v24 }
 0x1cc   : > { %vm2258_vm14 = vcmp.ge.f32.partialorder %v2229_v4, 0.0  ;;  %v2287_v33 = vmul.f32 %v4080_v30, %v2229_v4  ;;  %v2230_v9 = vadd.f32 %v3196_v28, %v4078_v24 }
 0x1cd   : > { %v2317_v6 = vsel %vm2260_vm13, %v2231_v3, %v2289_v5  ;;  %vm2261_vm15 = vcmp.ge.f32.partialorder %v2232_v32, 0.0  ;;  %v2290_v34 = vmul.f32 %v4080_v30, %v2232_v32 }
 0x1ce   : > { %v2760_v43 = vpack.c.bf16 %v2317_v6, %v2317_v6  ;;  %v2315_v38 = vsel %vm2258_vm14, %v2229_v4, %v2287_v33  ;;  %vm2259_vm0 = vcmp.ge.f32.partialorder %v2230_v9, 0.0  ;;  %v2288_v11 = vmul.f32 %v4080_v30, %v2230_v9  ;;  %v3053_v41 = vpop.f32.mrb[16].mxu1  ;;  %v3169_v45 = vpop.f32.mrb[12].mxu0 }
 0x1cf   : > { %v2758_v47 = vpack.c.bf16 %v2315_v38, %v2315_v38  ;;  %v2318_v49 = vsel %vm2261_vm15, %v2232_v32, %v2290_v34  ;;  %v3197_v13 = vadd.f32 %v3169_v45, %v4067_v12  ;;  %v1380_v36 = vpop.f32.mrb[17].mxu1  ;;  %v2123_v54 = vpop.f32.mrb[13].mxu0 }
 0x1d0   : > { %2458 = vst.msk [vmem:[%s4092_s17 + $0x28] sm:$0xf] %vm2447_vm6, %v2760_v43  ;;  %v2761_v55 = vpack.c.bf16 %v2318_v49, %v2318_v49  ;;  %v2316_v56 = vsel %vm2259_vm0, %v2230_v9, %v2288_v11  ;;  %v3198_v58 = vadd.f32 %v2123_v54, %v4069_v18  ;;  %v3054_v29 = vpop.f32.mrb[18].mxu1  ;;  %v3170_v59 = vpop.f32.mrb[14].mxu0 }
 0x1d1   : > { %2456 = vst.msk [vmem:[%s4092_s17 + $0x20] sm:$0xf] %vm2447_vm6, %v2758_v47  ;;  %v2759_v53 = vpack.c.bf16 %v2316_v56, %v2316_v56  ;;  %v2235_v0 = vadd.f32 %v3197_v13, %v4078_v24  ;;  %v3199_v14 = vadd.f32 %v3170_v59, %v4071_v20  ;;  %v1383_v19 = vpop.f32.mrb[19].mxu1  ;;  %v2126_v12 = vpop.f32.mrb[15].mxu0 }
 0x1d2   : > { %2459 = vst.msk [vmem:[%s4092_s17 + $0x2c] sm:$0xf] %vm2447_vm6, %v2761_v55  ;;  %v2233_v37 = vadd.f32 %v3198_v58, %v4078_v24  ;;  %v3200_v7 = vadd.f32 %v2126_v12, %v4073_v21 }
 0x1d3   : > { %2457 = vst.msk [vmem:[%s4092_s17 + $0x24] sm:$0xf] %vm2447_vm6, %v2759_v53  ;;  %vm2264_vm1 = vcmp.ge.f32.partialorder %v2235_v0, 0.0  ;;  %v2293_v18 = vmul.f32 %v4080_v30, %v2235_v0  ;;  %v2236_v44 = vadd.f32 %v3199_v14, %v4078_v24 }
 0x1d4   : > { %vm2262_vm2 = vcmp.ge.f32.partialorder %v2233_v37, 0.0  ;;  %v2291_v8 = vmul.f32 %v4080_v30, %v2233_v37  ;;  %v2234_v20 = vadd.f32 %v3200_v7, %v4078_v24 }
 0x1d5   : > { %v2321_v2 = vsel %vm2264_vm1, %v2235_v0, %v2293_v18  ;;  %vm2265_vm3 = vcmp.ge.f32.partialorder %v2236_v44, 0.0  ;;  %v2294_v15 = vmul.f32 %v4080_v30, %v2236_v44 }
 0x1d6   : > { %v2764_v50 = vpack.c.bf16 %v2321_v2, %v2321_v2  ;;  %v2319_v52 = vsel %vm2262_vm2, %v2233_v37, %v2291_v8  ;;  %vm2263_vm4 = vcmp.ge.f32.partialorder %v2234_v20, 0.0  ;;  %v2292_v21 = vmul.f32 %v4080_v30, %v2234_v20  ;;  %v3057_v60 = vpop.f32.mrb[20].mxu1  ;;  %v3173_v63 = vpop.f32.mrb[16].mxu0 }
 0x1d7   : > { %v2762_v16 = vpack.c.bf16 %v2319_v52, %v2319_v52  ;;  %v2322_v26 = vsel %vm2265_vm3, %v2236_v44, %v2294_v15  ;;  %v3201_v17 = vadd.f32 %v3173_v63, %v3053_v41  ;;  %v1396_v35 = vpop.f32.mrb[21].mxu1  ;;  %v2139_v31 = vpop.f32.mrb[17].mxu0 }
 0x1d8   : > { %2462 = vst.msk [vmem:[%s4092_s17 + $0x38] sm:$0xf] %vm2447_vm6, %v2764_v50  ;;  %v2765_v42 = vpack.c.bf16 %v2322_v26, %v2322_v26  ;;  %v2320_v48 = vsel %vm2263_vm4, %v2234_v20, %v2292_v21  ;;  %v3202_v57 = vadd.f32 %v2139_v31, %v1380_v36  ;;  %v3058_v1 = vpop.f32.mrb[22].mxu1  ;;  %v3174_v10 = vpop.f32.mrb[18].mxu0 }
 0x1d9   : > { %2460 = vst.msk [vmem:[%s4092_s17 + $0x30] sm:$0xf] %vm2447_vm6, %v2762_v16  ;;  %v2763_v22 = vpack.c.bf16 %v2320_v48, %v2320_v48  ;;  %v2239_v25 = vadd.f32 %v3201_v17, %v4078_v24  ;;  %v3203_v39 = vadd.f32 %v3174_v10, %v3054_v29  ;;  %v1399_v40 = vpop.f32.mrb[23].mxu1  ;;  %v2142_v46 = vpop.f32.mrb[19].mxu0 }
 0x1da   : > { %2463 = vst.msk [vmem:[%s4092_s17 + $0x3c] sm:$0xf] %vm2447_vm6, %v2765_v42  ;;  %v2237_v51 = vadd.f32 %v3202_v57, %v4078_v24  ;;  %v3204_v61 = vadd.f32 %v2142_v46, %v1383_v19 }
 0x1db   : > { %2461 = vst.msk [vmem:[%s4092_s17 + $0x34] sm:$0xf] %vm2447_vm6, %v2763_v22  ;;  %vm2268_vm5 = vcmp.ge.f32.partialorder %v2239_v25, 0.0  ;;  %v2297_v62 = vmul.f32 %v4080_v30, %v2239_v25  ;;  %v2240_v3 = vadd.f32 %v3203_v39, %v4078_v24 }
 0x1dc   : > { %vm2266_vm7 = vcmp.ge.f32.partialorder %v2237_v51, 0.0  ;;  %v2295_v23 = vmul.f32 %v4080_v30, %v2237_v51  ;;  %v2238_v27 = vadd.f32 %v3204_v61, %v4078_v24 }
 0x1dd   : > { %v2325_v4 = vsel %vm2268_vm5, %v2239_v25, %v2297_v62  ;;  %vm2269_vm8 = vcmp.ge.f32.partialorder %v2240_v3, 0.0  ;;  %v2298_v28 = vmul.f32 %v4080_v30, %v2240_v3 }
 0x1de   : > { %v2768_v5 = vpack.c.bf16 %v2325_v4, %v2325_v4  ;;  %v2323_v32 = vsel %vm2266_vm7, %v2237_v51, %v2295_v23  ;;  %vm2267_vm9 = vcmp.ge.f32.partialorder %v2238_v27, 0.0  ;;  %v2296_v33 = vmul.f32 %v4080_v30, %v2238_v27  ;;  %v3061_v9 = vpop.f32.mrb[24].mxu1  ;;  %v3177_v6 = vpop.f32.mrb[20].mxu0 }
 0x1df   : > { %v2766_v34 = vpack.c.bf16 %v2323_v32, %v2323_v32  ;;  %v2326_v43 = vsel %vm2269_vm8, %v2240_v3, %v2298_v28  ;;  %v3205_v38 = vadd.f32 %v3177_v6, %v3057_v60  ;;  %v1412_v11 = vpop.f32.mrb[25].mxu1  ;;  %v2155_v41 = vpop.f32.mrb[21].mxu0 }
 0x1e0   : > { %2466 = vst.msk [vmem:[%s4092_s17 + $0x48] sm:$0xf] %vm2447_vm6, %v2768_v5  ;;  %v2769_v45 = vpack.c.bf16 %v2326_v43, %v2326_v43  ;;  %v2324_v47 = vsel %vm2267_vm9, %v2238_v27, %v2296_v33  ;;  %v3206_v49 = vadd.f32 %v2155_v41, %v1396_v35  ;;  %v3062_v13 = vpop.f32.mrb[26].mxu1  ;;  %v3178_v36 = vpop.f32.mrb[22].mxu0 }
 0x1e1   : > { %2464 = vst.msk [vmem:[%s4092_s17 + $0x40] sm:$0xf] %vm2447_vm6, %v2766_v34  ;;  %v2767_v54 = vpack.c.bf16 %v2324_v47, %v2324_v47  ;;  %v2243_v55 = vadd.f32 %v3205_v38, %v4078_v24  ;;  %v3207_v56 = vadd.f32 %v3178_v36, %v3058_v1  ;;  %v1415_v58 = vpop.f32.mrb[27].mxu1  ;;  %v2158_v29 = vpop.f32.mrb[23].mxu0 }
 0x1e2   : > { %2467 = vst.msk [vmem:[%s4092_s17 + $0x4c] sm:$0xf] %vm2447_vm6, %v2769_v45  ;;  %v2241_v59 = vadd.f32 %v3206_v49, %v4078_v24  ;;  %v3208_v53 = vadd.f32 %v2158_v29, %v1399_v40 }
 0x1e3   : > { %2465 = vst.msk [vmem:[%s4092_s17 + $0x44] sm:$0xf] %vm2447_vm6, %v2767_v54  ;;  %vm2272_vm10 = vcmp.ge.f32.partialorder %v2243_v55, 0.0  ;;  %v2301_v0 = vmul.f32 %v4080_v30, %v2243_v55  ;;  %v2244_v14 = vadd.f32 %v3207_v56, %v4078_v24 }
 0x1e4   : > { %vm2270_vm11 = vcmp.ge.f32.partialorder %v2241_v59, 0.0  ;;  %v2299_v19 = vmul.f32 %v4080_v30, %v2241_v59  ;;  %v2242_v12 = vadd.f32 %v3208_v53, %v4078_v24 }
 0x1e5   : > { %v2329_v37 = vsel %vm2272_vm10, %v2243_v55, %v2301_v0  ;;  %vm2273_vm12 = vcmp.ge.f32.partialorder %v2244_v14, 0.0  ;;  %v2302_v7 = vmul.f32 %v4080_v30, %v2244_v14 }
 0x1e6   : > { %v2772_v18 = vpack.c.bf16 %v2329_v37, %v2329_v37  ;;  %v2327_v44 = vsel %vm2270_vm11, %v2241_v59, %v2299_v19  ;;  %vm2271_vm13 = vcmp.ge.f32.partialorder %v2242_v12, 0.0  ;;  %v2300_v8 = vmul.f32 %v4080_v30, %v2242_v12  ;;  %v3181_v20 = vpop.f32.mrb[24].mxu0 }
 0x1e7   : > { %v2770_v2 = vpack.c.bf16 %v2327_v44, %v2327_v44  ;;  %v2330_v15 = vsel %vm2273_vm12, %v2244_v14, %v2302_v7  ;;  %v3209_v50 = vadd.f32 %v3181_v20, %v3061_v9  ;;  %v2171_v52 = vpop.f32.mrb[25].mxu0 }
 0x1e8   : > { %2470 = vst.msk [vmem:[%s4092_s17 + $0x58] sm:$0xf] %vm2447_vm6, %v2772_v18  ;;  %v2773_v21 = vpack.c.bf16 %v2330_v15, %v2330_v15  ;;  %v2328_v60 = vsel %vm2271_vm13, %v2242_v12, %v2300_v8  ;;  %v3210_v63 = vadd.f32 %v2171_v52, %v1412_v11  ;;  %v3182_v16 = vpop.f32.mrb[26].mxu0 }
 0x1e9   : > { %2468 = vst.msk [vmem:[%s4092_s17 + $0x50] sm:$0xf] %vm2447_vm6, %v2770_v2  ;;  %v2771_v26 = vpack.c.bf16 %v2328_v60, %v2328_v60  ;;  %v2247_v17 = vadd.f32 %v3209_v50, %v4078_v24  ;;  %v3211_v35 = vadd.f32 %v3182_v16, %v3062_v13  ;;  %v2174_v31 = vpop.f32.mrb[27].mxu0 }
 0x1ea   : > { %2471 = vst.msk [vmem:[%s4092_s17 + $0x5c] sm:$0xf] %vm2447_vm6, %v2773_v21  ;;  %v2245_v42 = vadd.f32 %v3210_v63, %v4078_v24  ;;  %v3212_v48 = vadd.f32 %v2174_v31, %v1415_v58 }
 0x1eb   : > { %2469 = vst.msk [vmem:[%s4092_s17 + $0x54] sm:$0xf] %vm2447_vm6, %v2771_v26  ;;  %vm2276_vm14 = vcmp.ge.f32.partialorder %v2247_v17, 0.0  ;;  %v2305_v57 = vmul.f32 %v4080_v30, %v2247_v17  ;;  %v2248_v1 = vadd.f32 %v3211_v35, %v4078_v24 }
 0x1ec   : > { %vm2274_vm15 = vcmp.ge.f32.partialorder %v2245_v42, 0.0  ;;  %v2303_v10 = vmul.f32 %v4080_v30, %v2245_v42  ;;  %v2246_v22 = vadd.f32 %v3212_v48, %v4078_v24 }
 0x1ed   : > { %v2333_v25 = vsel %vm2276_vm14, %v2247_v17, %v2305_v57  ;;  %vm2277_vm0 = vcmp.ge.f32.partialorder %v2248_v1, 0.0  ;;  %v2306_v39 = vmul.f32 %v4080_v30, %v2248_v1 }
 0x1ee   : > { %v2776_v40 = vpack.c.bf16 %v2333_v25, %v2333_v25  ;;  %v2331_v46 = vsel %vm2274_vm15, %v2245_v42, %v2303_v10  ;;  %vm2275_vm1 = vcmp.ge.f32.partialorder %v2246_v22, 0.0  ;;  %v2304_v51 = vmul.f32 %v4080_v30, %v2246_v22 }
 0x1ef   : > { %v2774_v61 = vpack.c.bf16 %v2331_v46, %v2331_v46  ;;  %v2334_v62 = vsel %vm2277_vm0, %v2248_v1, %v2306_v39 }
 0x1f0   : > { %2474 = vst.msk [vmem:[%s4092_s17 + $0x68] sm:$0xf] %vm2447_vm6, %v2776_v40  ;;  %v2777_v3 = vpack.c.bf16 %v2334_v62, %v2334_v62  ;;  %v2332_v23 = vsel %vm2275_vm1, %v2246_v22, %v2304_v51 }
 0x1f1   : > { %2472 = vst.msk [vmem:[%s4092_s17 + $0x60] sm:$0xf] %vm2447_vm6, %v2774_v61  ;;  %v2775_v27 = vpack.c.bf16 %v2332_v23, %v2332_v23 }
 0x1f2   : > { %2475 = vst.msk [vmem:[%s4092_s17 + $0x6c] sm:$0xf] %vm2447_vm6, %v2777_v3 }
 0x1f3   : > { %2473 = vst.msk [vmem:[%s4092_s17 + $0x64] sm:$0xf] %vm2447_vm6, %v2775_v27 }
 0x1f4 PF: > { %s15_s19 = sadd.s32 1, %s3486_s19   ;;  %s4222_s17 = smov %s3482_s18 }
 0x1f5   : > { %p12_p5 = scmp.ge.s32.totalorder %s15_s19, 4   ;;  %s4223_s18 = smov %s4225_s3 }
 0x1f7   :  { %14 = sbr.rel (!%p12_p5) target bundleno = 2 (0x2), region = 75 }

</bundles_post_ra>
